<compile_context>
chip_gen: v7x
topology: tpu7x:2x2x1
jax: 0.10.0
libtpu: 0.0.40
codegen_flags: <defaults>
</compile_context>

<pallas_src>
import functools

import numpy as np
import jax
import jax.numpy as jnp
from jax.experimental import pallas as pl
from jax.experimental.pallas import tpu as pltpu

LANE = 128
SUBLANE = 8
DEFAULT_TILE = 256                      # 256 for v5e; 256-512 for v6e/v7x
RESIDENT_BYTES_MAX = 8 * 1024 * 1024    # keep XW1 / H1 VMEM-resident below this


def _round_up(x, m):
    return ((x + m - 1) // m) * m


def _pad2(a, rows, cols, dtype=None):
    out = jnp.pad(a, ((0, rows - a.shape[0]), (0, cols - a.shape[1])))
    return out.astype(dtype) if dtype is not None else out


def _vmem_limit(resident_bytes, streamed_bytes, scratch_bytes):
    """Footprint-based VMEM request (double-buffered operands + scratch +
    headroom), capped at 48 MiB so the same config also fits v7x's 64 MiB
    physical VMEM.  Raise the cap on v5e/v6e for very large resident H1."""
    est = 2 * (resident_bytes + streamed_bytes) + scratch_bytes + (4 << 20)
    return int(min(48 << 20, max(8 << 20, est)))


# ----------------------------------------------------------------------------
# Kernel 1: GCN layer 1 aggregation + folded BN + ReLU (tiled).
#   h1[i] = relu( sum_k A[i,k] @ XW1[k] + b1' )       (X@W1' hoisted to XLA)
# grid = (row blocks, reduction blocks); bf16 matmul, fp32 accumulator.
# ----------------------------------------------------------------------------
def _gcn1_kernel(resident, tile_k, adj_ref, xw_ref, b_ref, h1_ref, acc_ref):
    k = pl.program_id(1)

    @pl.when(k == 0)
    def _():
        acc_ref[...] = jnp.zeros_like(acc_ref)

    if resident:                         # whole XW1 resident in VMEM, slice it
        start = pl.multiple_of(k * tile_k, tile_k)
        xw_blk = xw_ref[pl.ds(start, tile_k), :]
    else:                                # streamed (tile_k, Hp) block
        xw_blk = xw_ref[...]
    acc_ref[...] += jnp.dot(adj_ref[...], xw_blk,
                            preferred_element_type=jnp.float32)

    @pl.when(k == pl.num_programs(1) - 1)
    def _():
        h1_ref[...] = jnp.maximum(acc_ref[...] + b_ref[...],
                                  0.0).astype(h1_ref.dtype)


def gcn_agg_bn_relu(adj, xw1, b1, *, tile_n, tile_k):
    Np = adj.shape[0]
    Hp = xw1.shape[1]
    resident = (Np * Hp * xw1.dtype.itemsize) <= RESIDENT_BYTES_MAX
    if resident:
        xw_spec = pl.BlockSpec((Np, Hp), lambda i, k: (0, 0))   # DMA'd once
        xw_res, xw_str = Np * Hp * 2, 0
    else:
        xw_spec = pl.BlockSpec((tile_k, Hp), lambda i, k: (k, 0))
        xw_res, xw_str = 0, tile_k * Hp * 2
    grid = (Np // tile_n, Np // tile_k)
    return pl.pallas_call(
        functools.partial(_gcn1_kernel, resident, tile_k),
        out_shape=jax.ShapeDtypeStruct((Np, Hp), jnp.bfloat16),
        grid_spec=pltpu.PrefetchScalarGridSpec(
            num_scalar_prefetch=0,
            grid=grid,
            in_specs=[
                pl.BlockSpec((tile_n, tile_k), lambda i, k: (i, k)),  # A tile
                xw_spec,                                              # XW1
                pl.BlockSpec((1, Hp), lambda i, k: (0, 0)),           # bias
            ],
            out_specs=pl.BlockSpec((tile_n, Hp), lambda i, k: (i, 0)),
            scratch_shapes=[pltpu.VMEM((tile_n, Hp), jnp.float32)],
        ),
        compiler_params=pltpu.CompilerParams(
            dimension_semantics=("parallel", "arbitrary"),
            vmem_limit_bytes=_vmem_limit(
                resident_bytes=xw_res + Hp * 4,
                streamed_bytes=tile_n * tile_k * 2 + xw_str + tile_n * Hp * 2,
                scratch_bytes=tile_n * Hp * 4),
        ),
    )(adj, xw1, b1)


# ----------------------------------------------------------------------------
# Kernel 2: GCN layer 2, aggregate-first, + folded BN + ReLU + per-row-block
#           partial mean-pool.  Row axis is "parallel" (megacore shardable on
#           v7x); the partial pooled sums go to a lane-dense [ni, Bp, Hp]
#           output and are reduced in kernel 3.
# ----------------------------------------------------------------------------
def _gcn2_pool_kernel(resident, tile_k, adj_ref, h1_ref, w2_ref, b2_ref, p_ref,
                      pout_ref, acc_ref):
    k = pl.program_id(1)

    @pl.when(k == 0)
    def _():
        acc_ref[...] = jnp.zeros_like(acc_ref)

    if resident:
        start = pl.multiple_of(k * tile_k, tile_k)
        h1_blk = h1_ref[pl.ds(start, tile_k), :]
    else:
        h1_blk = h1_ref[...]
    acc_ref[...] += jnp.dot(adj_ref[...], h1_blk,
                            preferred_element_type=jnp.float32)

    @pl.when(k == pl.num_programs(1) - 1)
    def _():
        # aggregate-first: (A @ H1) @ W2' applied once per row block
        h2 = jnp.maximum(
            jnp.dot(acc_ref[...].astype(jnp.bfloat16), w2_ref[...],
                    preferred_element_type=jnp.float32) + b2_ref[...], 0.0)
        pout_ref[0] = jnp.dot(p_ref[...], h2.astype(jnp.bfloat16),
                              preferred_element_type=jnp.float32)


def gcn2_pool_partial(adj, h1, w2, b2, pmat, *, tile_n, tile_k):
    Np = adj.shape[0]
    Hp = w2.shape[1]
    Bp = pmat.shape[0]
    ni = Np // tile_n
    resident = (Np * Hp * h1.dtype.itemsize) <= RESIDENT_BYTES_MAX
    if resident:
        h1_spec = pl.BlockSpec((Np, Hp), lambda i, k: (0, 0))   # DMA'd once
        h1_res, h1_str = Np * Hp * 2, 0
    else:
        h1_spec = pl.BlockSpec((tile_k, Hp), lambda i, k: (k, 0))
        h1_res, h1_str = 0, tile_k * Hp * 2
    grid = (ni, Np // tile_k)
    return pl.pallas_call(
        functools.partial(_gcn2_pool_kernel, resident, tile_k),
        out_shape=jax.ShapeDtypeStruct((ni, Bp, Hp), jnp.float32),
        grid_spec=pltpu.PrefetchScalarGridSpec(
            num_scalar_prefetch=0,
            grid=grid,
            in_specs=[
                pl.BlockSpec((tile_n, tile_k), lambda i, k: (i, k)),  # A tile
                h1_spec,                                              # H1
                pl.BlockSpec((Hp, Hp), lambda i, k: (0, 0)),          # W2'
                pl.BlockSpec((1, Hp), lambda i, k: (0, 0)),           # b2'
                pl.BlockSpec((Bp, tile_n), lambda i, k: (0, i)),      # pool cols
            ],
            out_specs=pl.BlockSpec((1, Bp, Hp), lambda i, k: (i, 0, 0)),
            scratch_shapes=[pltpu.VMEM((tile_n, Hp), jnp.float32)],
        ),
        compiler_params=pltpu.CompilerParams(
            dimension_semantics=("parallel", "arbitrary"),
            vmem_limit_bytes=_vmem_limit(
                resident_bytes=h1_res + Hp * Hp * 2 + Hp * 4,
                streamed_bytes=(tile_n * tile_k * 2 + h1_str
                                + Bp * tile_n * 2 + Bp * Hp * 4),
                scratch_bytes=tile_n * Hp * 4),
        ),
    )(adj, h1, w2, b2, pmat)


# ----------------------------------------------------------------------------
# Kernel 3: reduce partial pooled sums + 1-step LSTM + FC + log_softmax.
# Tiny single-invocation kernel; everything fits VMEM.  Gate order matches
# PyTorch: [i | f | g | o], each gate slice is a lane-aligned 128-lane block.
# ----------------------------------------------------------------------------
def _pool_lstm_fc_kernel(use_hidden, *refs):
    if use_hidden:
        (part_ref, wih_ref, whh_ref, h0_ref, c0_ref, blstm_ref, fcw_ref,
         fcb_ref, logp_ref, h_out_ref, c_out_ref) = refs
    else:
        (part_ref, wih_ref, blstm_ref, fcw_ref, fcb_ref,
         logp_ref, h_out_ref, c_out_ref) = refs
        whh_ref = h0_ref = c0_ref = None
    Hp = h_out_ref.shape[1]

    pooled = jnp.sum(part_ref[...], axis=0)                    # (Bp, Hp) fp32
    gates = (jnp.dot(pooled.astype(jnp.bfloat16), wih_ref[...],
                     preferred_element_type=jnp.float32) + blstm_ref[...])
    if use_hidden:
        gates = gates + jnp.dot(h0_ref[...].astype(jnp.bfloat16), whh_ref[...],
                                preferred_element_type=jnp.float32)
    i_g = jax.nn.sigmoid(gates[:, 0:Hp])
    g_g = jnp.tanh(gates[:, 2 * Hp:3 * Hp])
    o_g = jax.nn.sigmoid(gates[:, 3 * Hp:4 * Hp])
    if use_hidden:
        f_g = jax.nn.sigmoid(gates[:, Hp:2 * Hp])
        c = f_g * c0_ref[...] + i_g * g_g
    else:
        c = i_g * g_g              # h0 = c0 = 0: forget-gate term dropped
    h = o_g * jnp.tanh(c)
    h_out_ref[...] = h
    c_out_ref[...] = c

    logits = (jnp.dot(h.astype(jnp.bfloat16), fcw_ref[...],
                      preferred_element_type=jnp.float32) + fcb_ref[...])
    m = jnp.max(logits, axis=1, keepdims=True)
    shifted = logits - m
    lse = jnp.log(jnp.sum(jnp.exp(shifted), axis=1, keepdims=True))
    logp_ref[...] = shifted - lse


def pool_lstm_fc(pool_parts, wih, blstm, fcw, fcb, hidden=None, whh=None):
    Bp, Hp = pool_parts.shape[1], pool_parts.shape[2]
    Cp = fcw.shape[1]
    use_hidden = hidden is not None
    args = [pool_parts, wih]
    if use_hidden:
        h0, c0 = hidden
        args += [whh, h0, c0]
    args += [blstm, fcw, fcb]
    return pl.pallas_call(
        functools.partial(_pool_lstm_fc_kernel, use_hidden),
        out_shape=(jax.ShapeDtypeStruct((Bp, Cp), jnp.float32),
                   jax.ShapeDtypeStruct((Bp, Hp), jnp.float32),
                   jax.ShapeDtypeStruct((Bp, Hp), jnp.float32)),
    )(*args)


# ----------------------------------------------------------------------------
# Parameter construction / host-side folding & padding
# ----------------------------------------------------------------------------
def make_params(key, num_node_features, hidden_dim, num_classes):
    """Logical (unpadded) params, weights pre-transposed to [in, out]."""
    ks = jax.random.split(key, 6)

    def xavier(k, fan_in, fan_out):
        limit = np.sqrt(6.0 / (fan_in + fan_out))
        return jax.random.uniform(k, (fan_in, fan_out), jnp.float32, -limit, limit)

    lstm_lim = 1.0 / np.sqrt(hidden_dim)
    H = hidden_dim
    return {
        "w1": xavier(ks[0], num_node_features, H),
        "b1": jnp.zeros((H,), jnp.float32),
        "w2": xavier(ks[1], H, H),
        "b2": jnp.zeros((H,), jnp.float32),
        # eval-mode BatchNorm1d of a fresh model: gamma=1, beta=0, mean=0, var=1
        "bn1_gamma": jnp.ones((H,), jnp.float32), "bn1_beta": jnp.zeros((H,), jnp.float32),
        "bn1_mean": jnp.zeros((H,), jnp.float32), "bn1_var": jnp.ones((H,), jnp.float32),
        "bn2_gamma": jnp.ones((H,), jnp.float32), "bn2_beta": jnp.zeros((H,), jnp.float32),
        "bn2_mean": jnp.zeros((H,), jnp.float32), "bn2_var": jnp.ones((H,), jnp.float32),
        "w_ih": jax.random.uniform(ks[2], (H, 4 * H), jnp.float32, -lstm_lim, lstm_lim),
        "w_hh": jax.random.uniform(ks[3], (H, 4 * H), jnp.float32, -lstm_lim, lstm_lim),
        "b_lstm": jax.random.uniform(ks[4], (4 * H,), jnp.float32, -lstm_lim, lstm_lim),
        "fc_w": xavier(ks[5], H, num_classes),
        "fc_b": jnp.zeros((num_classes,), jnp.float32),
        "hidden_dim": hidden_dim,
        "num_classes": num_classes,
    }


def fold_and_pad_params(p, eps=1e-5):
    """Fold eval-mode BN into GCN weights/biases, pad all feature dims to 128
    lanes (per-gate padding for the LSTM), cast matmul operands to bf16."""
    H, C = p["hidden_dim"], p["num_classes"]
    F = p["w1"].shape[0]
    Hp = _round_up(H, LANE)
    Cp = _round_up(C, LANE)

    def fold(w, b, gamma, beta, mean, var):
        scale = gamma / jnp.sqrt(var + eps)
        shift = beta - mean * scale
        return w * scale[None, :], b * scale + shift

    w1f, b1f = fold(p["w1"], p["b1"], p["bn1_gamma"], p["bn1_beta"],
                    p["bn1_mean"], p["bn1_var"])
    w2f, b2f = fold(p["w2"], p["b2"], p["bn2_gamma"], p["bn2_beta"],
                    p["bn2_mean"], p["bn2_var"])

    def pad_gates(w):                  # [in, 4H] -> [Hp, 4Hp], per-gate padding
        win = w.shape[0]
        w4 = w.reshape(win, 4, H)
        w4 = jnp.pad(w4, ((0, Hp - win), (0, 0), (0, Hp - H)))
        return w4.reshape(Hp, 4 * Hp)

    b4 = jnp.pad(p["b_lstm"].reshape(4, H), ((0, 0), (0, Hp - H))).reshape(1, 4 * Hp)

    fc_b = jnp.full((1, Cp), -1e9, jnp.float32)   # padded classes -> -inf logits
    fc_b = fc_b.at[0, :C].set(p["fc_b"])

    return {
        "Hp": Hp, "Cp": Cp, "H": H, "C": C, "F": F,
        "w1": _pad2(w1f, F, Hp, jnp.bfloat16),
        "b1": _pad2(b1f[None, :], 1, Hp, jnp.float32),
        "w2": _pad2(w2f, Hp, Hp, jnp.bfloat16),
        "b2": _pad2(b2f[None, :], 1, Hp, jnp.float32),
        "w_ih": pad_gates(p["w_ih"]).astype(jnp.bfloat16),
        "w_hh": pad_gates(p["w_hh"]).astype(jnp.bfloat16),
        "b_lstm": b4.astype(jnp.float32),
        "fc_w": _pad2(p["fc_w"], Hp, Cp, jnp.bfloat16),
        "fc_b": fc_b,
    }


def _pad_graph_inputs(x, adj_norm, pool_mat, tile):
    N = x.shape[0]
    B = pool_mat.shape[0]
    Np = _round_up(max(N, tile), tile)
    Bp = _round_up(max(B, SUBLANE), SUBLANE)
    x_p = _pad2(x, Np, x.shape[1], jnp.bfloat16)
    adj_p = _pad2(adj_norm, Np, Np, jnp.bfloat16)
    pool_p = _pad2(pool_mat, Bp, Np, jnp.bfloat16)
    return x_p, adj_p, pool_p, Np, Bp


# ----------------------------------------------------------------------------
# Full forward (glue in plain JAX, hot path in three Pallas calls)
# ----------------------------------------------------------------------------
def gnn_lstm_forward(x, adj_norm, pool_mat, fp, hidden=None, *, tile=DEFAULT_TILE):
    B = pool_mat.shape[0]
    H, C, Hp = fp["H"], fp["C"], fp["Hp"]

    x_p, adj_p, pool_p, _, Bp = _pad_graph_inputs(x, adj_norm, pool_mat, tile)

    # Hoisted feature transform: XW1 = X @ W1' done once (trivial N x F x Hp).
    xw1 = jnp.dot(x_p, fp["w1"],
                  preferred_element_type=jnp.float32).astype(jnp.bfloat16)

    h1 = gcn_agg_bn_relu(adj_p, xw1, fp["b1"], tile_n=tile, tile_k=tile)
    pool_parts = gcn2_pool_partial(adj_p, h1, fp["w2"], fp["b2"], pool_p,
                                   tile_n=tile, tile_k=tile)

    if hidden is None:
        hid, whh = None, None                    # cold start: skip w_hh path
    else:
        h0 = _pad2(hidden[0][0], Bp, Hp, jnp.float32)
        c0 = _pad2(hidden[1][0], Bp, Hp, jnp.float32)
        hid, whh = (h0, c0), fp["w_hh"]

    logp_p, h_p, c_p = pool_lstm_fc(pool_parts, fp["w_ih"], fp["b_lstm"],
                                    fp["fc_w"], fp["fc_b"], hidden=hid, whh=whh)

    logp = logp_p[:B, :C]
    return logp, (h_p[:B, :H][None], c_p[:B, :H][None])


def build_graph(num_nodes, batch_vec, edge_index):
    """Dense GCN-normalized adjacency (with self loops) and mean-pool matrix."""
    N = num_nodes
    src, dst = edge_index
    A = jnp.zeros((N, N), jnp.float32).at[dst, src].add(1.0)
    A = A + jnp.eye(N, dtype=jnp.float32)
    deg = A.sum(axis=1)
    dinv = 1.0 / jnp.sqrt(deg)
    A_norm = dinv[:, None] * A * dinv[None, :]

    B = int(batch_vec.max()) + 1
    onehot = (batch_vec[None, :] == jnp.arange(B)[:, None]).astype(jnp.float32)
    pool_mat = onehot / onehot.sum(axis=1, keepdims=True)
    return A_norm, pool_mat


# ----------------------------------------------------------------------------
# Pure-JAX references for correctness checks
# ----------------------------------------------------------------------------
def reference_forward_f32(x, A, P, p, hidden=None):
    """Unpadded full-fp32 reference (eval-mode semantics)."""
    H, eps = p["hidden_dim"], 1e-5

    def bn(h, g, b, m, v):
        return (h - m) / jnp.sqrt(v + eps) * g + b

    h = jnp.maximum(bn(A @ (x @ p["w1"]) + p["b1"], p["bn1_gamma"], p["bn1_beta"],
                       p["bn1_mean"], p["bn1_var"]), 0.0)
    h = jnp.maximum(bn(A @ (h @ p["w2"]) + p["b2"], p["bn2_gamma"], p["bn2_beta"],
                       p["bn2_mean"], p["bn2_var"]), 0.0)
    pooled = P @ h
    B = P.shape[0]
    if hidden is None:
        h0 = jnp.zeros((B, H)); c0 = jnp.zeros((B, H))
    else:
        h0, c0 = hidden[0][0], hidden[1][0]
    gates = pooled @ p["w_ih"] + h0 @ p["w_hh"] + p["b_lstm"]
    i = jax.nn.sigmoid(gates[:, :H]); f = jax.nn.sigmoid(gates[:, H:2 * H])
    g = jnp.tanh(gates[:, 2 * H:3 * H]); o = jax.nn.sigmoid(gates[:, 3 * H:])
    c = f * c0 + i * g
    hn = o * jnp.tanh(c)
    logits = hn @ p["fc_w"] + p["fc_b"]
    return jax.nn.log_softmax(logits, axis=1), (hn[None], c[None])


def reference_forward_matched(x_p, adj_p, pool_p, fp, B, hidden_p=None):
    """Pure-JAX reference mirroring the kernels' bf16/fp32 mixed precision and
    the aggregate-first compute order of kernel 2."""
    bf, f32 = jnp.bfloat16, jnp.float32
    Hp = fp["Hp"]
    xw1 = jnp.dot(x_p, fp["w1"], preferred_element_type=f32).astype(bf)
    h1 = jnp.maximum(jnp.dot(adj_p, xw1, preferred_element_type=f32)
                     + fp["b1"], 0.0).astype(bf)
    agg2 = jnp.dot(adj_p, h1, preferred_element_type=f32)            # A @ H1
    h2 = jnp.maximum(jnp.dot(agg2.astype(bf), fp["w2"],
                             preferred_element_type=f32) + fp["b2"], 0.0)
    pooled = jnp.dot(pool_p, h2.astype(bf), preferred_element_type=f32)
    gates = jnp.dot(pooled.astype(bf), fp["w_ih"],
                    preferred_element_type=f32) + fp["b_lstm"]
    if hidden_p is not None:
        h0, c0 = hidden_p
        gates = gates + jnp.dot(h0.astype(bf), fp["w_hh"],
                                preferred_element_type=f32)
    i = jax.nn.sigmoid(gates[:, :Hp])
    g = jnp.tanh(gates[:, 2 * Hp:3 * Hp])
    o = jax.nn.sigmoid(gates[:, 3 * Hp:])
    if hidden_p is not None:
        f = jax.nn.sigmoid(gates[:, Hp:2 * Hp])
        c = f * c0 + i * g
    else:
        c = i * g
    h = o * jnp.tanh(c)
    logits = jnp.dot(h.astype(bf), fp["fc_w"], preferred_element_type=f32) + fp["fc_b"]
    return jax.nn.log_softmax(logits, axis=1)[:B, :fp["C"]]


if __name__ == "__main__":
    num_node_features, hidden_dim, num_classes = 8, 32, 4
    N_per_graph, B = 8, 2
    N = N_per_graph * B

    key = jax.random.PRNGKey(0)
    k_x, k_p = jax.random.split(key)

    x = jax.random.normal(k_x, (N, num_node_features), jnp.float32)

    # two disjoint bidirectional ring graphs
    src, dst = [], []
    for g in range(B):
        base = g * N_per_graph
        for i in range(N_per_graph):
            a, b = base + i, base + (i + 1) % N_per_graph
            src += [a, b]
            dst += [b, a]
    edge_index = jnp.array([src, dst], dtype=jnp.int32)
    batch_vec = jnp.repeat(jnp.arange(B, dtype=jnp.int32), N_per_graph)

    adj_norm, pool_mat = build_graph(N, batch_vec, edge_index)
    params = make_params(k_p, num_node_features, hidden_dim, num_classes)
    fp = fold_and_pad_params(params)

    # cold-start step (hidden=None -> w_hh matmul skipped inside kernel 3)
    logp, hidden = gnn_lstm_forward(x, adj_norm, pool_mat, fp)
    jax.block_until_ready(logp)
    jax.block_until_ready(hidden)

    # second step reusing the returned hidden state (full LSTM path)
    logp2, hidden2 = gnn_lstm_forward(x, adj_norm, pool_mat, fp, hidden=hidden)
    jax.block_until_ready(logp2)

    # --- correctness checks ---
    x_p, adj_p, pool_p, _, Bp = _pad_graph_inputs(x, adj_norm, pool_mat, DEFAULT_TILE)

    ref1_m = reference_forward_matched(x_p, adj_p, pool_p, fp, B)
    np.testing.assert_allclose(np.asarray(logp), np.asarray(ref1_m), rtol=5e-3, atol=5e-3)

    ref1_f, _ = reference_forward_f32(x, adj_norm, pool_mat, params)
    np.testing.assert_allclose(np.asarray(logp), np.asarray(ref1_f), rtol=5e-2, atol=5e-2)

    h0_p = _pad2(hidden[0][0], Bp, fp["Hp"], jnp.float32)
    c0_p = _pad2(hidden[1][0], Bp, fp["Hp"], jnp.float32)
    ref2_m = reference_forward_matched(x_p, adj_p, pool_p, fp, B, hidden_p=(h0_p, c0_p))
    np.testing.assert_allclose(np.asarray(logp2), np.asarray(ref2_m), rtol=5e-3, atol=5e-3)

    assert logp.shape == (B, num_classes)
    assert hidden[0].shape == (1, B, hidden_dim) and hidden[1].shape == (1, B, hidden_dim)
    assert logp2.shape == (B, num_classes)

    print("KERNEL_OK")
</pallas_src>

<mosaic_0001>
module attributes {stable_mosaic.version = 11 : i64} {
  func.func @_gcn1_kernel(%arg0: i32, %arg1: i32, %arg2: memref<256x256xbf16, #tpu.memory_space<vmem>>, %arg3: memref<256x128xbf16, #tpu.memory_space<vmem>>, %arg4: memref<1x128xf32, #tpu.memory_space<vmem>>, %arg5: memref<256x128xbf16, #tpu.memory_space<vmem>>, %arg6: memref<256x128xf32, #tpu.memory_space<vmem>>) attributes {dimension_semantics = [#tpu.dimension_semantics<parallel>, #tpu.dimension_semantics<arbitrary>], iteration_bounds = array<i64: 1, 1>, scalar_prefetch = 0 : i64, scratch_operands = 1 : i64, tpu.core_type = #tpu.core_type<tc>, window_params = [{transform_indices = @transform_0, window_bounds = array<i64: 256, 256>}, {pipeline_mode = #tpu.pipeline_mode<synchronous>, transform_indices = @transform_1, window_bounds = array<i64: 256, 128>}, {pipeline_mode = #tpu.pipeline_mode<synchronous>, transform_indices = @transform_2, window_bounds = array<i64: 1, 128>}, {transform_indices = @transform_3, window_bounds = array<i64: 256, 128>}]} {
    %c0_i32 = arith.constant 0 : i32
    %0 = arith.cmpi eq, %arg1, %c0_i32 : i32
    %1 = arith.extui %0 : i1 to i32
    %c0_i32_0 = arith.constant 0 : i32
    %2 = arith.cmpi ne, %1, %c0_i32_0 : i32
    scf.if %2 {
      %cst_9 = arith.constant 0.000000e+00 : f32
      %15 = vector.broadcast %cst_9 : f32 to vector<256x128xf32>
      %c0_10 = arith.constant 0 : index
      %c0_11 = arith.constant 0 : index
      %16 = vector.load %arg6[%c0_10, %c0_11] : memref<256x128xf32, #tpu.memory_space<vmem>>, vector<256x128xf32>
      tpu.vector_store %arg6[%c0_10, %c0_11], %15 {strides = array<i32>} : memref<256x128xf32, #tpu.memory_space<vmem>>, vector<256x128xf32>,
    } else {
    }
    %c256_i32 = arith.constant 256 : i32
    %3 = arith.muli %arg1, %c256_i32 : i32
    %4 = tpu.assume_multiple %3, 256 : i32
    %5 = arith.index_cast %4 : i32 to index
    %c0 = arith.constant 0 : index
    %6 = vector.load %arg3[%5, %c0] : memref<256x128xbf16, #tpu.memory_space<vmem>>, vector<256x128xbf16>
    %c0_1 = arith.constant 0 : index
    %c0_2 = arith.constant 0 : index
    %7 = vector.load %arg6[%c0_1, %c0_2] : memref<256x128xf32, #tpu.memory_space<vmem>>, vector<256x128xf32>
    %c0_3 = arith.constant 0 : index
    %c0_4 = arith.constant 0 : index
    %8 = vector.load %arg2[%c0_3, %c0_4] : memref<256x256xbf16, #tpu.memory_space<vmem>>, vector<256x256xbf16>
    %cst = arith.constant dense<0.000000e+00> : vector<256x128xf32>
    %9 = tpu.matmul %8, %6, %cst {dimension_numbers = #tpu.dot_dimension_numbers<[1], [0], [0], [1], [0, 0, 1, 1], [], []>} : vector<256x256xbf16>, vector<256x128xbf16>, vector<256x128xf32> -> vector<256x128xf32>
    %10 = arith.addf %7, %9 : vector<256x128xf32>
    %c0_5 = arith.constant 0 : index
    %c0_6 = arith.constant 0 : index
    %11 = vector.load %arg6[%c0_5, %c0_6] : memref<256x128xf32, #tpu.memory_space<vmem>>, vector<256x128xf32>
    tpu.vector_store %arg6[%c0_5, %c0_6], %10 {strides = array<i32>} : memref<256x128xf32, #tpu.memory_space<vmem>>, vector<256x128xf32>,
    %c0_i32_7 = arith.constant 0 : i32
    %12 = arith.cmpi eq, %arg1, %c0_i32_7 : i32
    %13 = arith.extui %12 : i1 to i32
    %c0_i32_8 = arith.constant 0 : i32
    %14 = arith.cmpi ne, %13, %c0_i32_8 : i32
    scf.if %14 {
      %c0_9 = arith.constant 0 : index
      %c0_10 = arith.constant 0 : index
      %15 = vector.load %arg6[%c0_9, %c0_10] : memref<256x128xf32, #tpu.memory_space<vmem>>, vector<256x128xf32>
      %c0_11 = arith.constant 0 : index
      %c0_12 = arith.constant 0 : index
      %16 = vector.load %arg4[%c0_11, %c0_12] : memref<1x128xf32, #tpu.memory_space<vmem>>, vector<1x128xf32>
      %17 = vector.broadcast %16 : vector<1x128xf32> to vector<256x128xf32>
      %18 = arith.addf %15, %17 : vector<256x128xf32>
      %cst_13 = arith.constant 0.000000e+00 : f32
      %19 = vector.broadcast %cst_13 : f32 to vector<256x128xf32>
      %20 = arith.maximumf %18, %19 : vector<256x128xf32>
      %21 = arith.truncf %20 : vector<256x128xf32> to vector<256x128xbf16>
      %c0_14 = arith.constant 0 : index
      %c0_15 = arith.constant 0 : index
      %22 = vector.load %arg5[%c0_14, %c0_15] : memref<256x128xbf16, #tpu.memory_space<vmem>>, vector<256x128xbf16>
      tpu.vector_store %arg5[%c0_14, %c0_15], %21 {strides = array<i32>} : memref<256x128xbf16, #tpu.memory_space<vmem>>, vector<256x128xbf16>,
    } else {
    }
    return
  }
  func.func @transform_0(%arg0: i32, %arg1: i32) -> (i32, i32) {
    %c0_i32 = arith.constant 0 : i32
    return %arg0, %arg1 : i32, i32
  }
  func.func @transform_1(%arg0: i32, %arg1: i32) -> (i32, i32) {
    %c0_i32 = arith.constant 0 : i32
    %c0_i32_0 = arith.constant 0 : i32
    %c0_i32_1 = arith.constant 0 : i32
    return %c0_i32, %c0_i32_0 : i32, i32
  }
  func.func @transform_2(%arg0: i32, %arg1: i32) -> (i32, i32) {
    %c0_i32 = arith.constant 0 : i32
    %c0_i32_0 = arith.constant 0 : i32
    %c0_i32_1 = arith.constant 0 : i32
    return %c0_i32, %c0_i32_0 : i32, i32
  }
  func.func @transform_3(%arg0: i32, %arg1: i32) -> (i32, i32) {
    %c0_i32 = arith.constant 0 : i32
    %c0_i32_0 = arith.constant 0 : i32
    return %arg0, %c0_i32 : i32, i32
  }
}

</mosaic_0001>

<bundles_post_ra>
// kernel: tpu_custom_call.1
= control target key start
LH: loop header
LB: loop body
LE: loop exit
PB: predicated region body
PF: predicated region fallthrough
CT: control target
= control target key end

     0   :  { %8 = vsyncpa [#allocation4], 0  ;;  %s1533_s0 = inlined_call_operand.hbm [shape: bf16[256,256], index: 0, kind: input, shape index: {}]   ;;  %s1534_s1 = inlined_call_operand.hbm [shape: bf16[256,128], index: 1, kind: input, shape index: {}]   ;;  %s1535_s2 = inlined_call_operand.vmem [shape: f32[1,128], index: 2, kind: input, shape index: {}]   ;;  %s1536_s3 = inlined_call_operand.hbm [shape: bf16[256,128], index: 3, kind: output, shape index: {}]  }
   0x1   :  { %9 = vsyncpa [#allocation7], 0 }
   0x2   :  { %10 = vsyncpa [#allocation5], 0  ;;  %s1427_s12 = smov [#allocation3]   ;;  %s1355_s16 = scalar_lea.hbm %s1533_s0, 4096 }
   0x3   :  { %s16_s13 = sshll.u32 %s1427_s12, 4  ;;  %p1356_p0 = scmp.ne.s32.totalorder %s1533_s0, %s1355_s16  ;;  %s17_s13 = int_to_ptr.vmem [resolvable:$true] %s16_s13 }
   0x4   :  { %p1359_p1 = scmp.lt.u32.totalorder %s1355_s16, %s1533_s0 }
   0x6   :  { %p1361_p2 = pnand %p1359_p1, %p1356_p0 }
   0x8   :  { %1364 = shalt.err (!%p1361_p2)
}
   0x9   :  { %s1365_s21 = scalar_lea.vmem %s17_s13, 4096  ;;  %p1370_p4 = scmp.lt.s32.totalorder %s17_s13, %s17_s13 }
   0xa   :  { %p1366_p3 = scmp.ne.s32.totalorder %s17_s13, %s1365_s21  ;;  %p1371_p5 = scmp.lt.s32.totalorder %s1365_s21, %s1365_s21 }
   0xc   :  { %p1372_p6 = por %p1371_p5, %p1370_p4 }
   0xe   :  { %p1373_p7 = pnand %p1372_p6, %p1366_p3 }
  0x10   :  { %1376 = shalt.err (!%p1373_p7)
}
  0x11   :  { %s1428_s22 = smov 128   ;;  %s1429_s23 = smov 8  }
  0x12   :  { %22 = dma.hbm_to_vmem [thread:$0]  %s1533_s0, 4096, %s17_s13, [#allocation4], %s1428_s22, %s1428_s22, %s1429_s23  }
  0x13   :  { %s1430_s26 = smov [#allocation6]   ;;  %s1377_s30 = scalar_lea.hbm %s1534_s1, 2048 }
  0x14   :  { %s28_s27 = sshll.u32 %s1430_s26, 4  ;;  %p1378_p8 = scmp.ne.s32.totalorder %s1534_s1, %s1377_s30  ;;  %s29_s27 = int_to_ptr.vmem [resolvable:$true] %s28_s27 }
  0x15   :  { %p1381_p9 = scmp.lt.u32.totalorder %s1377_s30, %s1534_s1 }
  0x17   :  { %p1383_p10 = pnand %p1381_p9, %p1378_p8 }
  0x19   :  { %1386 = shalt.err (!%p1383_p10)
}
  0x1a   :  { %s1387_s8 = scalar_lea.vmem %s29_s27, 2048  ;;  %p1392_p12 = scmp.lt.s32.totalorder %s29_s27, %s29_s27 }
  0x1b   :  { %p1388_p11 = scmp.ne.s32.totalorder %s29_s27, %s1387_s8  ;;  %p1393_p13 = scmp.lt.s32.totalorder %s1387_s8, %s1387_s8 }
  0x1d   :  { %p1394_p0 = por %p1393_p13, %p1392_p12 }
  0x1f   :  { %p1395_p1 = pnand %p1394_p0, %p1388_p11 }
  0x21   :  { %1398 = shalt.err (!%p1395_p1)
}
  0x22   :  { %s1431_s0 = smov 64   ;;  %s1432_s9 = smov 4  }
  0x23   :  { %34 = dma.hbm_to_vmem [thread:$0]  %s1534_s1, 2048, %s29_s27, [#allocation7], %s1431_s0, %s1431_s0, %s1432_s9  }
  0x24   :  { %1421 = dma.done.wait [#allocation4], 4096  }
  0x25   :  { %1422 = vsyncadd [#allocation4], 4294963200 }
  0x26   :  { %1423 = dma.done.wait [#allocation7], 2048  }
  0x27   :  { %1424 = vsyncadd [#allocation7], 4294965248  ;;  %v1291_v0 = vld [vmem:[#allocation6 + $0x40] sm:$0xff]   ;;  %v1293_v2 = vld [vmem:[#allocation6 + $0x48] sm:$0xff]  }
  0x28   :  { %v1292_v1 = vld [vmem:[#allocation6] sm:$0xff]   ;;  %1156 = vmatprep.subr.bf16.mxu0 %v1291_v0  ;;  %1268 = vmatprep.subr.bf16.mxu1 %v1291_v0  ;;  %v1294_v3 = vld [vmem:[#allocation6 + $0x8] sm:$0xff]   ;;  %v1295_v4 = vld [vmem:[#allocation6 + $0x50] sm:$0xff]  }
  0x29   :  { %1157 = vmatpush3.bf16.msra.mxu0 %v1292_v1  ;;  %1276 = vmatpush3.bf16.msra.mxu1 %v1292_v1  ;;  %v1296_v5 = vld [vmem:[#allocation6 + $0x10] sm:$0xff]   ;;  %v1297_v6 = vld [vmem:[#allocation6 + $0x58] sm:$0xff]   ;;  %v1299_v8 = vld [vmem:[#allocation6 + $0x60] sm:$0xff]  }
  0x2a   :  { %1158 = vmatprep.subr.bf16.mxu0 %v1293_v2  ;;  %1269 = vmatprep.subr.bf16.mxu1 %v1293_v2  ;;  %v1298_v7 = vld [vmem:[#allocation6 + $0x18] sm:$0xff]   ;;  %v1300_v9 = vld [vmem:[#allocation6 + $0x20] sm:$0xff]   ;;  %v1301_v10 = vld [vmem:[#allocation6 + $0x68] sm:$0xff]  }
  0x2b   :  { %v1309_v11 = vld [vmem:[#allocation3 + $0x4] ss:$8 sps:$4 sm:$0xff]   ;;  %v1303_v14 = vld [vmem:[#allocation6 + $0x70] sm:$0xff]   ;;  %v1305_v16 = vld [vmem:[#allocation6 + $0x78] sm:$0xff]  }
  0x2c   :  { %v1312_v12 = vld [vmem:[#allocation3 + $0x84] ss:$8 sps:$4 sm:$0xff]   ;;  %469 = vmatprep.mubr.bf16.mxu0 %v1309_v11  ;;  %v1304_v15 = vld [vmem:[#allocation6 + $0x30] sm:$0xff]   ;;  %v1306_v17 = vld [vmem:[#allocation6 + $0x38] sm:$0xff]  }
  0x2d   :  { %1159 = vmatpush3.bf16.msra.mxu0 %v1294_v3  ;;  %1277 = vmatpush3.bf16.msra.mxu1 %v1294_v3  ;;  %v1302_v13 = vld [vmem:[#allocation6 + $0x28] sm:$0xff]   ;;  %v1313_v20 = vld [vmem:[#allocation3 + $0x14] ss:$8 sps:$4 sm:$0xff]   ;;  %v1317_v22 = vld [vmem:[#allocation3 + $0x10] ss:$8 sps:$4 sm:$0xff]  }
  0x2e   :  { %1160 = vmatprep.subr.bf16.mxu0 %v1295_v4  ;;  %1270 = vmatprep.subr.bf16.mxu1 %v1295_v4  ;;  %v1307_v18 = vld [vmem:[#allocation3] ss:$8 sps:$4 sm:$0xff]   ;;  %v1315_v21 = vld [vmem:[#allocation3 + $0x94] ss:$8 sps:$4 sm:$0xff]   ;;  %v1318_v23 = vld [vmem:[#allocation3 + $0x90] ss:$8 sps:$4 sm:$0xff]  }
  0x2f   :  { %533 = vmatprep.mubr.bf16.mxu1 %v1312_v12  ;;  %v1310_v19 = vld [vmem:[#allocation3 + $0x80] ss:$8 sps:$4 sm:$0xff]   ;;  %v1319_v24 = vld [vmem:[#allocation3 + $0x24] ss:$8 sps:$4 sm:$0xff]   ;;  %v1325_v28 = vld [vmem:[#allocation3 + $0x34] ss:$8 sps:$4 sm:$0xff]  }
  0x30   :  { %v1321_v25 = vld [vmem:[#allocation3 + $0xa4] ss:$8 sps:$4 sm:$0xff]   ;;  %v1323_v26 = vld [vmem:[#allocation3 + $0x20] ss:$8 sps:$4 sm:$0xff]   ;;  %v1327_v29 = vld [vmem:[#allocation3 + $0xb4] ss:$8 sps:$4 sm:$0xff]  }
  0x31   :  { %1161 = vmatpush3.bf16.msra.mxu0 %v1296_v5  ;;  %1278 = vmatpush3.bf16.msra.mxu1 %v1296_v5  ;;  %v1324_v27 = vld [vmem:[#allocation3 + $0xa0] ss:$8 sps:$4 sm:$0xff]   ;;  %v1329_v30 = vld [vmem:[#allocation3 + $0x30] ss:$8 sps:$4 sm:$0xff]   ;;  %v1331_v32 = vld [vmem:[#allocation3 + $0x44] ss:$8 sps:$4 sm:$0xff]  }
  0x32   :  { %1162 = vmatprep.subr.bf16.mxu0 %v1297_v6  ;;  %1271 = vmatprep.subr.bf16.mxu1 %v1297_v6  ;;  %v1330_v31 = vld [vmem:[#allocation3 + $0xb0] ss:$8 sps:$4 sm:$0xff]   ;;  %v1333_v33 = vld [vmem:[#allocation3 + $0xc4] ss:$8 sps:$4 sm:$0xff]   ;;  %v1335_v34 = vld [vmem:[#allocation3 + $0x40] ss:$8 sps:$4 sm:$0xff]  }
  0x33   :  { %v1336_v35 = vld [vmem:[#allocation3 + $0xc0] ss:$8 sps:$4 sm:$0xff]   ;;  %v1337_v36 = vld [vmem:[#allocation3 + $0x54] ss:$8 sps:$4 sm:$0xff]   ;;  %v1341_v38 = vld [vmem:[#allocation3 + $0x50] ss:$8 sps:$4 sm:$0xff]  }
  0x34   :  { %v1339_v37 = vld [vmem:[#allocation3 + $0xd4] ss:$8 sps:$4 sm:$0xff]   ;;  %v1342_v39 = vld [vmem:[#allocation3 + $0xd0] ss:$8 sps:$4 sm:$0xff]   ;;  %v1343_v40 = vld [vmem:[#allocation3 + $0x64] ss:$8 sps:$4 sm:$0xff]  }
  0x35   :  { %1163 = vmatpush3.bf16.msra.mxu0 %v1298_v7  ;;  %1279 = vmatpush3.bf16.msra.mxu1 %v1298_v7  ;;  %v1345_v41 = vld [vmem:[#allocation3 + $0xe4] ss:$8 sps:$4 sm:$0xff]   ;;  %v1347_v42 = vld [vmem:[#allocation3 + $0x60] ss:$8 sps:$4 sm:$0xff]   ;;  %v1349_v44 = vld [vmem:[#allocation3 + $0x74] ss:$8 sps:$4 sm:$0xff]  }
  0x36   :  { %1164 = vmatprep.subr.bf16.mxu0 %v1299_v8  ;;  %1272 = vmatprep.subr.bf16.mxu1 %v1299_v8  ;;  %v1348_v43 = vld [vmem:[#allocation3 + $0xe0] ss:$8 sps:$4 sm:$0xff]   ;;  %v1351_v45 = vld [vmem:[#allocation3 + $0xf4] ss:$8 sps:$4 sm:$0xff]   ;;  %v1353_v46 = vld [vmem:[#allocation3 + $0x70] ss:$8 sps:$4 sm:$0xff]  }
  0x37   :  { %v1354_v47 = vld [vmem:[#allocation3 + $0xf0] ss:$8 sps:$4 sm:$0xff]   ;;  %v1484_v51 = vld [vmem:[%s1535_s2] ss:$0 sm:$0xff]  ;;  %s1433_s2 = smov [#allocation8]  }
  0x38   :  { %s933_s13 = sshll.u32 %s1433_s2, 4  ;;  %s934_s13 = int_to_ptr.vmem [resolvable:$true] %s933_s13 }
  0x39   :  { %1165 = vmatpush3.bf16.msra.mxu0 %v1300_v9  ;;  %1280 = vmatpush3.bf16.msra.mxu1 %v1300_v9  ;;  %s1399_s14 = scalar_lea.vmem %s934_s13, 2048  ;;  %p1404_p3 = scmp.lt.s32.totalorder %s934_s13, %s934_s13 }
  0x3a   :  { %1166 = vmatprep.subr.bf16.mxu0 %v1301_v10  ;;  %1273 = vmatprep.subr.bf16.mxu1 %v1301_v10  ;;  %p1400_p2 = scmp.ne.s32.totalorder %s934_s13, %s1399_s14  ;;  %p1405_p4 = scmp.lt.s32.totalorder %s1399_s14, %s1399_s14 }
  0x3c   :  { %p1406_p5 = por %p1405_p4, %p1404_p3 }
  0x3d   :  { %1167 = vmatpush3.bf16.msra.mxu0 %v1302_v13  ;;  %1281 = vmatpush3.bf16.msra.mxu1 %v1302_v13 }
  0x3e   :  { %1168 = vmatprep.subr.bf16.mxu0 %v1303_v14  ;;  %1274 = vmatprep.subr.bf16.mxu1 %v1303_v14  ;;  %p1407_p6 = pnand %p1406_p5, %p1400_p2 }
  0x41   :  { %1169 = vmatpush3.bf16.msra.mxu0 %v1304_v15  ;;  %1282 = vmatpush3.bf16.msra.mxu1 %v1304_v15 }
  0x42   :  { %1170 = vmatprep.subr.bf16.mxu0 %v1305_v16  ;;  %1275 = vmatprep.subr.bf16.mxu1 %v1305_v16 }
  0x45   :  { %1171 = vmatpush3.bf16.msra.mxu0 %v1306_v17  ;;  %1283 = vmatpush3.bf16.msra.mxu1 %v1306_v17 }
  0x48   :  { %470 = vmatmul.mubr.bf16.vlgmr.msra.gmra.mrb[0].mxu0 %v1307_v18  ;;  %534 = vmatmul.mubr.bf16.vlgmr.msra.gmra.mrb[0].mxu1 %v1310_v19 }
  0x49   :  { %477 = vmatprep.mubr.bf16.mxu0 %v1313_v20  ;;  %541 = vmatprep.mubr.bf16.mxu1 %v1315_v21 }
  0x50   :  { %478 = vmatmul.mubr.bf16.gmra.mrb[4].mxu0 %v1317_v22  ;;  %542 = vmatmul.mubr.bf16.gmra.mrb[4].mxu1 %v1318_v23 }
  0x51   :  { %485 = vmatprep.mubr.bf16.mxu0 %v1319_v24  ;;  %549 = vmatprep.mubr.bf16.mxu1 %v1321_v25 }
  0x58   :  { %486 = vmatmul.mubr.bf16.gmra.mrb[8].mxu0 %v1323_v26  ;;  %550 = vmatmul.mubr.bf16.gmra.mrb[8].mxu1 %v1324_v27 }
  0x59   :  { %493 = vmatprep.mubr.bf16.mxu0 %v1325_v28  ;;  %557 = vmatprep.mubr.bf16.mxu1 %v1327_v29 }
  0x60   :  { %494 = vmatmul.mubr.bf16.gmra.mrb[12].mxu0 %v1329_v30  ;;  %558 = vmatmul.mubr.bf16.gmra.mrb[12].mxu1 %v1330_v31 }
  0x61   :  { %501 = vmatprep.mubr.bf16.mxu0 %v1331_v32  ;;  %565 = vmatprep.mubr.bf16.mxu1 %v1333_v33 }
  0x68   :  { %502 = vmatmul.mubr.bf16.gmra.mrb[16].mxu0 %v1335_v34  ;;  %566 = vmatmul.mubr.bf16.gmra.mrb[16].mxu1 %v1336_v35 }
  0x69   :  { %509 = vmatprep.mubr.bf16.mxu0 %v1337_v36  ;;  %573 = vmatprep.mubr.bf16.mxu1 %v1339_v37 }
  0x70   :  { %510 = vmatmul.mubr.bf16.gmra.mrb[20].mxu0 %v1341_v38  ;;  %574 = vmatmul.mubr.bf16.gmra.mrb[20].mxu1 %v1342_v39 }
  0x71   :  { %517 = vmatprep.mubr.bf16.mxu0 %v1343_v40  ;;  %581 = vmatprep.mubr.bf16.mxu1 %v1345_v41 }
  0x78   :  { %518 = vmatmul.mubr.bf16.gmra.mrb[24].mxu0 %v1347_v42  ;;  %582 = vmatmul.mubr.bf16.gmra.mrb[24].mxu1 %v1348_v43 }
  0x79   :  { %525 = vmatprep.mubr.bf16.mxu0 %v1349_v44  ;;  %589 = vmatprep.mubr.bf16.mxu1 %v1351_v45 }
  0x80   :  { %526 = vmatmul.mubr.bf16.gmra.mrb[28].mxu0 %v1353_v46  ;;  %590 = vmatmul.mubr.bf16.gmra.mrb[28].mxu1 %v1354_v47 }
 0x11b   :  { %v1172_v48 = vpop.f32.mrb[0].mxu0  ;;  %v1220_v49 = vpop.f32.mrb[0].mxu1 }
 0x11c   :  { %v1173_v50 = vpop.f32.mrb[1].mxu0  ;;  %v1221_v52 = vpop.f32.mrb[1].mxu1 }
 0x11d   :  { %v1174_v53 = vadd.f32 %v1173_v50, %v1172_v48  ;;  %v1222_v54 = vadd.f32 %v1221_v52, %v1220_v49  ;;  %v1175_v55 = vpop.f32.mrb[2].mxu0  ;;  %v1223_v56 = vpop.f32.mrb[2].mxu1 }
 0x11e   :  { %v1176_v57 = vpop.f32.mrb[3].mxu0  ;;  %v1224_v58 = vpop.f32.mrb[3].mxu1 }
 0x11f   :  { %v704_v59 = vadd.f32 %v1174_v53, %v1484_v51  ;;  %v720_v60 = vadd.f32 %v1222_v54, %v1484_v51  ;;  %v1177_v61 = vadd.f32 %v1176_v57, %v1175_v55  ;;  %v1225_v62 = vadd.f32 %v1224_v58, %v1223_v56 }
 0x121   :  { %v705_v63 = vadd.f32 %v1177_v61, %v1484_v51  ;;  %v721_v0 = vadd.f32 %v1225_v62, %v1484_v51  ;;  %v736_v1 = vmax.f32 %v704_v59, 0.0  ;;  %v752_v2 = vmax.f32 %v720_v60, 0.0 }
 0x123   :  { %v737_v3 = vmax.f32 %v705_v63, 0.0  ;;  %v753_v4 = vmax.f32 %v721_v0, 0.0  ;;  %v1178_v5 = vpop.f32.mrb[4].mxu0  ;;  %v1226_v6 = vpop.f32.mrb[4].mxu1 }
 0x124   :  { %v1179_v7 = vpop.f32.mrb[5].mxu0  ;;  %v1227_v8 = vpop.f32.mrb[5].mxu1 }
 0x125   :  { %v1064_v9 = vpack.c.bf16 %v737_v3, %v736_v1  ;;  %v1104_v10 = vpack.c.bf16 %v753_v4, %v752_v2  ;;  %v1180_v11 = vadd.f32 %v1179_v7, %v1178_v5  ;;  %v1228_v12 = vadd.f32 %v1227_v8, %v1226_v6  ;;  %v1181_v13 = vpop.f32.mrb[6].mxu0  ;;  %v1229_v14 = vpop.f32.mrb[6].mxu1 }
 0x126   :  { %v1182_v15 = vpop.f32.mrb[7].mxu0  ;;  %v1230_v16 = vpop.f32.mrb[7].mxu1 }
 0x127   :  { %1065 = vst [vmem:[#allocation8] sm:$0xff] %v1064_v9   ;;  %1148 = vst [vmem:[#allocation8 + $0x40] sm:$0xff] %v1104_v10   ;;  %v706_v17 = vadd.f32 %v1180_v11, %v1484_v51  ;;  %v722_v18 = vadd.f32 %v1228_v12, %v1484_v51  ;;  %v1183_v19 = vadd.f32 %v1182_v15, %v1181_v13 }
 0x128   :  { %v1231_v20 = vadd.f32 %v1230_v16, %v1229_v14 }
 0x129   :  { %v707_v21 = vadd.f32 %v1183_v19, %v1484_v51  ;;  %v738_v23 = vmax.f32 %v706_v17, 0.0  ;;  %v754_v24 = vmax.f32 %v722_v18, 0.0 }
 0x12a   :  { %v723_v22 = vadd.f32 %v1231_v20, %v1484_v51 }
 0x12b   :  { %v739_v25 = vmax.f32 %v707_v21, 0.0  ;;  %v1184_v27 = vpop.f32.mrb[8].mxu0  ;;  %v1232_v28 = vpop.f32.mrb[8].mxu1 }
 0x12c   :  { %v755_v26 = vmax.f32 %v723_v22, 0.0  ;;  %v1185_v29 = vpop.f32.mrb[9].mxu0  ;;  %v1233_v30 = vpop.f32.mrb[9].mxu1 }
 0x12d   :  { %v1069_v31 = vpack.c.bf16 %v739_v25, %v738_v23  ;;  %v1186_v33 = vadd.f32 %v1185_v29, %v1184_v27  ;;  %v1234_v34 = vadd.f32 %v1233_v30, %v1232_v28  ;;  %v1187_v35 = vpop.f32.mrb[10].mxu0  ;;  %v1235_v36 = vpop.f32.mrb[10].mxu1 }
 0x12e   :  { %v1109_v32 = vpack.c.bf16 %v755_v26, %v754_v24  ;;  %v1188_v37 = vpop.f32.mrb[11].mxu0  ;;  %v1236_v38 = vpop.f32.mrb[11].mxu1 }
 0x12f   :  { %1141 = vst [vmem:[#allocation8 + $0x8] sm:$0xff] %v1069_v31   ;;  %v708_v39 = vadd.f32 %v1186_v33, %v1484_v51  ;;  %v724_v40 = vadd.f32 %v1234_v34, %v1484_v51  ;;  %v1189_v41 = vadd.f32 %v1188_v37, %v1187_v35  ;;  %v1237_v42 = vadd.f32 %v1236_v38, %v1235_v36 }
 0x130   :  { %1149 = vst [vmem:[#allocation8 + $0x48] sm:$0xff] %v1109_v32  }
 0x131   :  { %v709_v43 = vadd.f32 %v1189_v41, %v1484_v51  ;;  %v725_v44 = vadd.f32 %v1237_v42, %v1484_v51  ;;  %v740_v45 = vmax.f32 %v708_v39, 0.0  ;;  %v756_v46 = vmax.f32 %v724_v40, 0.0 }
 0x133   :  { %v741_v47 = vmax.f32 %v709_v43, 0.0  ;;  %v757_v48 = vmax.f32 %v725_v44, 0.0  ;;  %v1190_v49 = vpop.f32.mrb[12].mxu0  ;;  %v1238_v50 = vpop.f32.mrb[12].mxu1 }
 0x134   :  { %v1191_v52 = vpop.f32.mrb[13].mxu0  ;;  %v1239_v53 = vpop.f32.mrb[13].mxu1 }
 0x135   :  { %v1074_v54 = vpack.c.bf16 %v741_v47, %v740_v45  ;;  %v1114_v55 = vpack.c.bf16 %v757_v48, %v756_v46  ;;  %v1192_v56 = vadd.f32 %v1191_v52, %v1190_v49  ;;  %v1240_v57 = vadd.f32 %v1239_v53, %v1238_v50  ;;  %v1193_v58 = vpop.f32.mrb[14].mxu0  ;;  %v1241_v59 = vpop.f32.mrb[14].mxu1 }
 0x136   :  { %v1194_v60 = vpop.f32.mrb[15].mxu0  ;;  %v1242_v61 = vpop.f32.mrb[15].mxu1 }
 0x137   :  { %1142 = vst [vmem:[#allocation8 + $0x10] sm:$0xff] %v1074_v54   ;;  %1150 = vst [vmem:[#allocation8 + $0x50] sm:$0xff] %v1114_v55   ;;  %v710_v62 = vadd.f32 %v1192_v56, %v1484_v51  ;;  %v726_v63 = vadd.f32 %v1240_v57, %v1484_v51  ;;  %v1195_v0 = vadd.f32 %v1194_v60, %v1193_v58 }
 0x138   :  { %v1243_v1 = vadd.f32 %v1242_v61, %v1241_v59 }
 0x139   :  { %v711_v2 = vadd.f32 %v1195_v0, %v1484_v51  ;;  %v742_v4 = vmax.f32 %v710_v62, 0.0  ;;  %v758_v5 = vmax.f32 %v726_v63, 0.0 }
 0x13a   :  { %v727_v3 = vadd.f32 %v1243_v1, %v1484_v51 }
 0x13b   :  { %v743_v6 = vmax.f32 %v711_v2, 0.0  ;;  %v1196_v8 = vpop.f32.mrb[16].mxu0  ;;  %v1244_v9 = vpop.f32.mrb[16].mxu1 }
 0x13c   :  { %v759_v7 = vmax.f32 %v727_v3, 0.0  ;;  %v1197_v10 = vpop.f32.mrb[17].mxu0  ;;  %v1245_v11 = vpop.f32.mrb[17].mxu1 }
 0x13d   :  { %v1079_v12 = vpack.c.bf16 %v743_v6, %v742_v4  ;;  %v1198_v14 = vadd.f32 %v1197_v10, %v1196_v8  ;;  %v1246_v15 = vadd.f32 %v1245_v11, %v1244_v9  ;;  %v1199_v16 = vpop.f32.mrb[18].mxu0  ;;  %v1247_v17 = vpop.f32.mrb[18].mxu1 }
 0x13e   :  { %v1119_v13 = vpack.c.bf16 %v759_v7, %v758_v5  ;;  %v1200_v18 = vpop.f32.mrb[19].mxu0  ;;  %v1248_v19 = vpop.f32.mrb[19].mxu1 }
 0x13f   :  { %1143 = vst [vmem:[#allocation8 + $0x18] sm:$0xff] %v1079_v12   ;;  %v712_v20 = vadd.f32 %v1198_v14, %v1484_v51  ;;  %v728_v21 = vadd.f32 %v1246_v15, %v1484_v51  ;;  %v1201_v22 = vadd.f32 %v1200_v18, %v1199_v16  ;;  %v1249_v23 = vadd.f32 %v1248_v19, %v1247_v17 }
 0x140   :  { %1151 = vst [vmem:[#allocation8 + $0x58] sm:$0xff] %v1119_v13  }
 0x141   :  { %v713_v24 = vadd.f32 %v1201_v22, %v1484_v51  ;;  %v729_v25 = vadd.f32 %v1249_v23, %v1484_v51  ;;  %v744_v26 = vmax.f32 %v712_v20, 0.0  ;;  %v760_v27 = vmax.f32 %v728_v21, 0.0 }
 0x143   :  { %v745_v28 = vmax.f32 %v713_v24, 0.0  ;;  %v761_v29 = vmax.f32 %v729_v25, 0.0  ;;  %v1202_v30 = vpop.f32.mrb[20].mxu0  ;;  %v1250_v31 = vpop.f32.mrb[20].mxu1 }
 0x144   :  { %v1203_v32 = vpop.f32.mrb[21].mxu0  ;;  %v1251_v33 = vpop.f32.mrb[21].mxu1 }
 0x145   :  { %v1084_v34 = vpack.c.bf16 %v745_v28, %v744_v26  ;;  %v1124_v35 = vpack.c.bf16 %v761_v29, %v760_v27  ;;  %v1204_v36 = vadd.f32 %v1203_v32, %v1202_v30  ;;  %v1252_v37 = vadd.f32 %v1251_v33, %v1250_v31  ;;  %v1205_v38 = vpop.f32.mrb[22].mxu0  ;;  %v1253_v39 = vpop.f32.mrb[22].mxu1 }
 0x146   :  { %v1206_v40 = vpop.f32.mrb[23].mxu0  ;;  %v1254_v41 = vpop.f32.mrb[23].mxu1 }
 0x147   :  { %1144 = vst [vmem:[#allocation8 + $0x20] sm:$0xff] %v1084_v34   ;;  %1152 = vst [vmem:[#allocation8 + $0x60] sm:$0xff] %v1124_v35   ;;  %v714_v42 = vadd.f32 %v1204_v36, %v1484_v51  ;;  %v730_v43 = vadd.f32 %v1252_v37, %v1484_v51  ;;  %v1207_v44 = vadd.f32 %v1206_v40, %v1205_v38 }
 0x148   :  { %v1255_v45 = vadd.f32 %v1254_v41, %v1253_v39 }
 0x149   :  { %v715_v46 = vadd.f32 %v1207_v44, %v1484_v51  ;;  %v746_v48 = vmax.f32 %v714_v42, 0.0  ;;  %v762_v49 = vmax.f32 %v730_v43, 0.0 }
 0x14a   :  { %v731_v47 = vadd.f32 %v1255_v45, %v1484_v51 }
 0x14b   :  { %v747_v50 = vmax.f32 %v715_v46, 0.0  ;;  %v1208_v53 = vpop.f32.mrb[24].mxu0  ;;  %v1256_v54 = vpop.f32.mrb[24].mxu1 }
 0x14c   :  { %v763_v52 = vmax.f32 %v731_v47, 0.0  ;;  %v1209_v55 = vpop.f32.mrb[25].mxu0  ;;  %v1257_v56 = vpop.f32.mrb[25].mxu1 }
 0x14d   :  { %v1089_v57 = vpack.c.bf16 %v747_v50, %v746_v48  ;;  %v1210_v59 = vadd.f32 %v1209_v55, %v1208_v53  ;;  %v1258_v60 = vadd.f32 %v1257_v56, %v1256_v54  ;;  %v1211_v61 = vpop.f32.mrb[26].mxu0  ;;  %v1259_v62 = vpop.f32.mrb[26].mxu1 }
 0x14e   :  { %v1129_v58 = vpack.c.bf16 %v763_v52, %v762_v49  ;;  %v1212_v63 = vpop.f32.mrb[27].mxu0  ;;  %v1260_v0 = vpop.f32.mrb[27].mxu1 }
 0x14f   :  { %1145 = vst [vmem:[#allocation8 + $0x28] sm:$0xff] %v1089_v57   ;;  %v716_v1 = vadd.f32 %v1210_v59, %v1484_v51  ;;  %v732_v2 = vadd.f32 %v1258_v60, %v1484_v51  ;;  %v1213_v3 = vadd.f32 %v1212_v63, %v1211_v61  ;;  %v1261_v4 = vadd.f32 %v1260_v0, %v1259_v62 }
 0x150   :  { %1153 = vst [vmem:[#allocation8 + $0x68] sm:$0xff] %v1129_v58  }
 0x151   :  { %v717_v5 = vadd.f32 %v1213_v3, %v1484_v51  ;;  %v733_v6 = vadd.f32 %v1261_v4, %v1484_v51  ;;  %v748_v7 = vmax.f32 %v716_v1, 0.0  ;;  %v764_v8 = vmax.f32 %v732_v2, 0.0 }
 0x153   :  { %v749_v9 = vmax.f32 %v717_v5, 0.0  ;;  %v765_v10 = vmax.f32 %v733_v6, 0.0  ;;  %v1214_v11 = vpop.f32.mrb[28].mxu0  ;;  %v1262_v12 = vpop.f32.mrb[28].mxu1 }
 0x154   :  { %v1215_v13 = vpop.f32.mrb[29].mxu0  ;;  %v1263_v14 = vpop.f32.mrb[29].mxu1 }
 0x155   :  { %v1094_v15 = vpack.c.bf16 %v749_v9, %v748_v7  ;;  %v1134_v16 = vpack.c.bf16 %v765_v10, %v764_v8  ;;  %v1216_v17 = vadd.f32 %v1215_v13, %v1214_v11  ;;  %v1264_v18 = vadd.f32 %v1263_v14, %v1262_v12  ;;  %v1217_v19 = vpop.f32.mrb[30].mxu0  ;;  %v1265_v20 = vpop.f32.mrb[30].mxu1 }
 0x156   :  { %v1218_v21 = vpop.f32.mrb[31].mxu0  ;;  %v1266_v22 = vpop.f32.mrb[31].mxu1 }
 0x157   :  { %1146 = vst [vmem:[#allocation8 + $0x30] sm:$0xff] %v1094_v15   ;;  %1154 = vst [vmem:[#allocation8 + $0x70] sm:$0xff] %v1134_v16   ;;  %v718_v23 = vadd.f32 %v1216_v17, %v1484_v51  ;;  %v734_v24 = vadd.f32 %v1264_v18, %v1484_v51  ;;  %v1219_v25 = vadd.f32 %v1218_v21, %v1217_v19 }
 0x158   :  { %v1267_v26 = vadd.f32 %v1266_v22, %v1265_v20 }
 0x159   :  { %v719_v27 = vadd.f32 %v1219_v25, %v1484_v51  ;;  %v750_v29 = vmax.f32 %v718_v23, 0.0  ;;  %v766_v30 = vmax.f32 %v734_v24, 0.0 }
 0x15a   :  { %v735_v28 = vadd.f32 %v1267_v26, %v1484_v51 }
 0x15b   :  { %v751_v31 = vmax.f32 %v719_v27, 0.0 }
 0x15c   :  { %v767_v32 = vmax.f32 %v735_v28, 0.0 }
 0x15d   :  { %v1099_v33 = vpack.c.bf16 %v751_v31, %v750_v29 }
 0x15e   :  { %v1139_v34 = vpack.c.bf16 %v767_v32, %v766_v30 }
 0x15f   :  { %1147 = vst [vmem:[#allocation8 + $0x38] sm:$0xff] %v1099_v33  }
 0x160   :  { %1155 = vst [vmem:[#allocation8 + $0x78] sm:$0xff] %v1139_v34  }
 0x161   :  { %1410 = shalt.err (!%p1407_p6)
}
 0x162   :  { %s1411_s17 = scalar_lea.hbm %s1536_s3, 2048 }
 0x163   :  { %p1412_p7 = scmp.ne.s32.totalorder %s1536_s3, %s1411_s17  ;;  %p1415_p8 = scmp.lt.u32.totalorder %s1411_s17, %s1536_s3 }
 0x165   :  { %p1417_p9 = pnand %p1415_p8, %p1412_p7 }
 0x167   :  { %1420 = shalt.err (!%p1417_p9)
}
 0x168   :  { %939 = dma.vmem_to_hbm [thread:$0]  %s934_s13, 2048, %s1536_s3, [#allocation5], %s1431_s0, %s1431_s0, %s1432_s9  }
 0x169   :  { %1425 = dma.done.wait [#allocation5], 2048  }
 0x16a   :  { %1426 = vsyncadd [#allocation5], 4294965248 }
 0x16b   :  { %943 = vsyncpa [#allocation4], 1 }
 0x16c   :  { %944 = vsyncpa [#allocation7], 1 }
 0x16d   :  { %945 = vsyncpa [#allocation5], 1 }

</bundles_post_ra>
